<compile_context>
chip_gen: v5e
topology: v5e:2x2
jax: 0.10.0
libtpu: 0.0.40
codegen_flags: <defaults>
</compile_context>

<pallas_src>
import functools

import jax
import jax.numpy as jnp
from jax.experimental import pallas as pl
from jax.experimental.pallas import tpu as pltpu


def _max_conv_linear_kernel(x_ref, w1_ref, wck_ref, o_ref, *, T, K, tb):
    # x_ref:   (P, tb*T)   patch pixels x (batch-tile * time), compute dtype
    # w1_ref:  (F, P)      fc1 weight, compute dtype
    # wck_ref: (C, K*F)    conv weight flattened k-major / f-minor, compute dtype
    # o_ref:   (1, tb)     per-batch maxima (lane-dense), f32
    Tout = T - K + 1

    # Stage 1: fc1 for the whole batch tile in a single MXU matmul, f32 accumulation.
    y = jnp.dot(w1_ref[...], x_ref[...], preferred_element_type=jnp.float32)  # (F, tb*T)

    wck = wck_ref[...]                                    # (C, K*F)
    maxes = []
    for b in range(tb):                                   # tb tiny & static -> unrolled
        yb = y[:, b * T:(b + 1) * T]                      # (F, T), f32
        # im2col: row k*F + f holds yb[f, k:k+Tout] (matches wck's k-major layout).
        win = jnp.concatenate([yb[:, k:k + Tout] for k in range(K)], axis=0)  # (K*F, Tout)
        # Stage 2: 'valid' temporal conv as one MXU matmul, f32 accumulation.
        zb = jnp.dot(wck, win.astype(wck.dtype),
                     preferred_element_type=jnp.float32)                      # (C, Tout)
        # max over conv channels then time == max over the whole (C, Tout) slab
        maxes.append(jnp.max(zb))

    o_ref[...] = jnp.stack(maxes).reshape(1, tb)


def _pick_batch_tile(B, T, max_tile=8):
    """Largest legal batch tile: keeps the x block's lane extent (tb*T) 128-aligned
    (or full) so the (8,128) BlockSpec constraint holds when the grid is > 1."""
    if B <= max_tile:
        return B            # single grid step; full-array blocks are always legal
    tb = B                  # fallback: one big tile (legal; VMEM-heavy only for huge B)
    for cand in range(1, max_tile + 1):
        if B % cand == 0 and (cand * T) % 128 == 0:
            tb = cand       # keep the largest legal divisor <= max_tile
    return tb


def max_conv_linear(x, w1, wc, *, compute_dtype=jnp.bfloat16, max_batch_tile=8):
    """x: (B,H,W,T); w1: (F, H*W) [fc1.weight]; wc: (C, F, K) [conv1.weight] -> (B,1) f32."""
    B, H, W, T = x.shape
    P = H * W
    F = w1.shape[0]
    C, F2, K = wc.shape
    assert F2 == F, "conv1 in_channels must equal num_linear_filts"
    assert w1.shape[1] == P, "fc1 weight must be (F, H*W)"
    assert T >= K, "num_timepoints must be >= conv kernel_size"

    # Wrapper-side layout plumbing (keeps the kernel lane-dense and slice-free):
    #   x -> (P, B*T): time/batch on lanes, patch pixels on sublanes.
    x_pbt = x.reshape(B, P, T).transpose(1, 0, 2).reshape(P, B * T).astype(compute_dtype)
    w1c = w1.astype(compute_dtype)
    #   conv weight -> (C, K*F), k-major / f-minor, matching the kernel's window
    #   concatenation order (hoisted out of the kernel: no per-tap slicing inside).
    wc_kf = wc.transpose(0, 2, 1).reshape(C, K * F).astype(compute_dtype)

    tb = _pick_batch_tile(B, T, max_batch_tile)
    grid_b = B // tb

    kernel = functools.partial(_max_conv_linear_kernel, T=T, K=K, tb=tb)

    out = pl.pallas_call(
        kernel,
        out_shape=jax.ShapeDtypeStruct((grid_b, tb), jnp.float32),
        grid=(grid_b,),
        in_specs=[
            pl.BlockSpec((P, tb * T), lambda i: (0, i)),    # batch tile of x
            pl.BlockSpec((F, P), lambda i: (0, 0)),         # fc1 weight (resident)
            pl.BlockSpec((C, K * F), lambda i: (0, 0)),     # conv weight (resident)
        ],
        out_specs=pl.BlockSpec((1, tb), lambda i: (i, 0)),  # lane-dense row of maxima
        compiler_params=pltpu.CompilerParams(
            dimension_semantics=("parallel",)),             # shards across TCs on v7x
    )(x_pbt, w1c, wc_kf)

    return out.reshape(B, 1)


def _reference_forward(x, w1, wc):
    """Pure-JAX f32 mirror of the PyTorch forward for verification."""
    B, H, W, T = x.shape
    xr = x.reshape(B, H * W, T).transpose(0, 2, 1)          # (B, T, P)
    y = xr @ w1.T                                           # (B, T, F)
    y = y.transpose(0, 2, 1)                                # (B, F, T)
    z = jax.lax.conv_general_dilated(
        y, wc, window_strides=(1,), padding="VALID",
        dimension_numbers=("NCH", "OIH", "NCH"))            # (B, C, T-K+1)
    m = jnp.max(z, axis=1)                                  # (B, T-K+1)
    m = jnp.max(m, axis=1)                                  # (B,)
    return m[:, None]                                       # (B, 1)


if __name__ == "__main__":
    # Small, module-consistent shapes: patch 9x9 -> P=81, F=1 linear filter,
    # C=3 conv filters, conv kernel K=30, T=64 timepoints, batch 2.
    B, H, Wp, T = 2, 9, 9, 64
    patch = H * Wp
    F_lin, C_conv, K = 1, 3, 30

    key = jax.random.PRNGKey(0)
    kx, k1, k2 = jax.random.split(key, 3)

    x = jax.random.normal(kx, (B, H, Wp, T), dtype=jnp.float32)

    # Deterministic PyTorch-style U(-1/sqrt(fan_in), 1/sqrt(fan_in)) init.
    b1 = 1.0 / (patch ** 0.5)
    w1 = jax.random.uniform(k1, (F_lin, patch), jnp.float32, -b1, b1)      # fc1.weight
    b2 = 1.0 / ((F_lin * K) ** 0.5)
    wc = jax.random.uniform(k2, (C_conv, F_lin, K), jnp.float32, -b2, b2)  # conv1.weight

    ref = _reference_forward(x, w1, wc)

    # f32 path: exact check against the reference.
    out_f32 = max_conv_linear(x, w1, wc, compute_dtype=jnp.float32)
    out_f32 = jax.block_until_ready(out_f32)
    assert out_f32.shape == (B, 1), out_f32.shape
    assert jnp.allclose(out_f32, ref, atol=1e-4, rtol=1e-4), (out_f32, ref)

    # bf16 compute path (default): loosened tolerance per the narrower matmul inputs.
    out_bf16 = max_conv_linear(x, w1, wc)
    out_bf16 = jax.block_until_ready(out_bf16)
    assert out_bf16.shape == (B, 1), out_bf16.shape
    assert jnp.allclose(out_bf16, ref, atol=5e-2, rtol=5e-2), (out_bf16, ref)

    print("KERNEL_OK")
</pallas_src>

<mosaic_0001>
module attributes {stable_mosaic.version = 11 : i64} {
  func.func @_max_conv_linear_kernel(%arg0: i32, %arg1: memref<81x128xf32, #tpu.memory_space<vmem>>, %arg2: memref<1x81xf32, #tpu.memory_space<vmem>>, %arg3: memref<3x30xf32, #tpu.memory_space<vmem>>, %arg4: memref<1x2xf32, #tpu.memory_space<vmem>>) attributes {dimension_semantics = [#tpu.dimension_semantics<parallel>], iteration_bounds = array<i64: 1>, scalar_prefetch = 0 : i64, scratch_operands = 0 : i64, tpu.core_type = #tpu.core_type<tc>, window_params = [{transform_indices = @transform_0, window_bounds = array<i64: 81, 128>}, {pipeline_mode = #tpu.pipeline_mode<synchronous>, transform_indices = @transform_1, window_bounds = array<i64: 1, 81>}, {pipeline_mode = #tpu.pipeline_mode<synchronous>, transform_indices = @transform_2, window_bounds = array<i64: 3, 30>}, {transform_indices = @transform_3, window_bounds = array<i64: 1, 2>}]} {
    %c0 = arith.constant 0 : index
    %c0_0 = arith.constant 0 : index
    %0 = vector.load %arg2[%c0, %c0_0] : memref<1x81xf32, #tpu.memory_space<vmem>>, vector<1x81xf32>
    %c0_1 = arith.constant 0 : index
    %c0_2 = arith.constant 0 : index
    %1 = vector.load %arg1[%c0_1, %c0_2] : memref<81x128xf32, #tpu.memory_space<vmem>>, vector<81x128xf32>
    %cst = arith.constant dense<0.000000e+00> : vector<1x128xf32>
    %2 = tpu.matmul %0, %1, %cst {dimension_numbers = #tpu.dot_dimension_numbers<[1], [0], [0], [1], [0, 0, 1, 1], [], []>} : vector<1x81xf32>, vector<81x128xf32>, vector<1x128xf32> -> vector<1x128xf32>
    %c0_3 = arith.constant 0 : index
    %c0_4 = arith.constant 0 : index
    %3 = vector.load %arg3[%c0_3, %c0_4] : memref<3x30xf32, #tpu.memory_space<vmem>>, vector<3x30xf32>
    %4 = vector.extract_strided_slice %2 {offsets = [0, 0], sizes = [1, 64], strides = [1, 1]} : vector<1x128xf32> to vector<1x64xf32>
    %5 = vector.extract_strided_slice %4 {offsets = [0, 0], sizes = [1, 35], strides = [1, 1]} : vector<1x64xf32> to vector<1x35xf32>
    %6 = vector.extract_strided_slice %4 {offsets = [0, 1], sizes = [1, 35], strides = [1, 1]} : vector<1x64xf32> to vector<1x35xf32>
    %7 = vector.extract_strided_slice %4 {offsets = [0, 2], sizes = [1, 35], strides = [1, 1]} : vector<1x64xf32> to vector<1x35xf32>
    %8 = vector.extract_strided_slice %4 {offsets = [0, 3], sizes = [1, 35], strides = [1, 1]} : vector<1x64xf32> to vector<1x35xf32>
    %9 = vector.extract_strided_slice %4 {offsets = [0, 4], sizes = [1, 35], strides = [1, 1]} : vector<1x64xf32> to vector<1x35xf32>
    %10 = vector.extract_strided_slice %4 {offsets = [0, 5], sizes = [1, 35], strides = [1, 1]} : vector<1x64xf32> to vector<1x35xf32>
    %11 = vector.extract_strided_slice %4 {offsets = [0, 6], sizes = [1, 35], strides = [1, 1]} : vector<1x64xf32> to vector<1x35xf32>
    %12 = vector.extract_strided_slice %4 {offsets = [0, 7], sizes = [1, 35], strides = [1, 1]} : vector<1x64xf32> to vector<1x35xf32>
    %13 = vector.extract_strided_slice %4 {offsets = [0, 8], sizes = [1, 35], strides = [1, 1]} : vector<1x64xf32> to vector<1x35xf32>
    %14 = vector.extract_strided_slice %4 {offsets = [0, 9], sizes = [1, 35], strides = [1, 1]} : vector<1x64xf32> to vector<1x35xf32>
    %15 = vector.extract_strided_slice %4 {offsets = [0, 10], sizes = [1, 35], strides = [1, 1]} : vector<1x64xf32> to vector<1x35xf32>
    %16 = vector.extract_strided_slice %4 {offsets = [0, 11], sizes = [1, 35], strides = [1, 1]} : vector<1x64xf32> to vector<1x35xf32>
    %17 = vector.extract_strided_slice %4 {offsets = [0, 12], sizes = [1, 35], strides = [1, 1]} : vector<1x64xf32> to vector<1x35xf32>
    %18 = vector.extract_strided_slice %4 {offsets = [0, 13], sizes = [1, 35], strides = [1, 1]} : vector<1x64xf32> to vector<1x35xf32>
    %19 = vector.extract_strided_slice %4 {offsets = [0, 14], sizes = [1, 35], strides = [1, 1]} : vector<1x64xf32> to vector<1x35xf32>
    %20 = vector.extract_strided_slice %4 {offsets = [0, 15], sizes = [1, 35], strides = [1, 1]} : vector<1x64xf32> to vector<1x35xf32>
    %21 = vector.extract_strided_slice %4 {offsets = [0, 16], sizes = [1, 35], strides = [1, 1]} : vector<1x64xf32> to vector<1x35xf32>
    %22 = vector.extract_strided_slice %4 {offsets = [0, 17], sizes = [1, 35], strides = [1, 1]} : vector<1x64xf32> to vector<1x35xf32>
    %23 = vector.extract_strided_slice %4 {offsets = [0, 18], sizes = [1, 35], strides = [1, 1]} : vector<1x64xf32> to vector<1x35xf32>
    %24 = vector.extract_strided_slice %4 {offsets = [0, 19], sizes = [1, 35], strides = [1, 1]} : vector<1x64xf32> to vector<1x35xf32>
    %25 = vector.extract_strided_slice %4 {offsets = [0, 20], sizes = [1, 35], strides = [1, 1]} : vector<1x64xf32> to vector<1x35xf32>
    %26 = vector.extract_strided_slice %4 {offsets = [0, 21], sizes = [1, 35], strides = [1, 1]} : vector<1x64xf32> to vector<1x35xf32>
    %27 = vector.extract_strided_slice %4 {offsets = [0, 22], sizes = [1, 35], strides = [1, 1]} : vector<1x64xf32> to vector<1x35xf32>
    %28 = vector.extract_strided_slice %4 {offsets = [0, 23], sizes = [1, 35], strides = [1, 1]} : vector<1x64xf32> to vector<1x35xf32>
    %29 = vector.extract_strided_slice %4 {offsets = [0, 24], sizes = [1, 35], strides = [1, 1]} : vector<1x64xf32> to vector<1x35xf32>
    %30 = vector.extract_strided_slice %4 {offsets = [0, 25], sizes = [1, 35], strides = [1, 1]} : vector<1x64xf32> to vector<1x35xf32>
    %31 = vector.extract_strided_slice %4 {offsets = [0, 26], sizes = [1, 35], strides = [1, 1]} : vector<1x64xf32> to vector<1x35xf32>
    %32 = vector.extract_strided_slice %4 {offsets = [0, 27], sizes = [1, 35], strides = [1, 1]} : vector<1x64xf32> to vector<1x35xf32>
    %33 = vector.extract_strided_slice %4 {offsets = [0, 28], sizes = [1, 35], strides = [1, 1]} : vector<1x64xf32> to vector<1x35xf32>
    %34 = vector.extract_strided_slice %4 {offsets = [0, 29], sizes = [1, 35], strides = [1, 1]} : vector<1x64xf32> to vector<1x35xf32>
    %35 = tpu.concatenate %5, %6, %7, %8, %9, %10, %11, %12, %13, %14, %15, %16, %17, %18, %19, %20 in 0 : vector<1x35xf32>, vector<1x35xf32>, vector<1x35xf32>, vector<1x35xf32>, vector<1x35xf32>, vector<1x35xf32>, vector<1x35xf32>, vector<1x35xf32>, vector<1x35xf32>, vector<1x35xf32>, vector<1x35xf32>, vector<1x35xf32>, vector<1x35xf32>, vector<1x35xf32>, vector<1x35xf32>, vector<1x35xf32> -> vector<16x35xf32>
    %36 = tpu.concatenate %21, %22, %23, %24, %25, %26, %27, %28, %29, %30, %31, %32, %33, %34 in 0 : vector<1x35xf32>, vector<1x35xf32>, vector<1x35xf32>, vector<1x35xf32>, vector<1x35xf32>, vector<1x35xf32>, vector<1x35xf32>, vector<1x35xf32>, vector<1x35xf32>, vector<1x35xf32>, vector<1x35xf32>, vector<1x35xf32>, vector<1x35xf32>, vector<1x35xf32> -> vector<14x35xf32>
    %37 = tpu.concatenate %35, %36 in 0 : vector<16x35xf32>, vector<14x35xf32> -> vector<30x35xf32>
    %cst_5 = arith.constant dense<0.000000e+00> : vector<3x35xf32>
    %38 = tpu.matmul %3, %37, %cst_5 {dimension_numbers = #tpu.dot_dimension_numbers<[1], [0], [0], [1], [0, 0, 1, 1], [], []>} : vector<3x30xf32>, vector<30x35xf32>, vector<3x35xf32> -> vector<3x35xf32>
    %39 = vector.shape_cast %38 : vector<3x35xf32> to vector<1x3x35xf32>
    %cst_6 = arith.constant dense<0xFF800000> : vector<1xf32>
    %40 = vector.multi_reduction <maximumf>, %39, %cst_6 [1, 2] : vector<1x3x35xf32> to vector<1xf32>
    %41 = vector.shape_cast %40 : vector<1xf32> to vector<1x1x1xf32>
    %42 = vector.extract %41[0, 0, 0] : f32 from vector<1x1x1xf32>
    %43 = vector.extract_strided_slice %2 {offsets = [0, 64], sizes = [1, 64], strides = [1, 1]} : vector<1x128xf32> to vector<1x64xf32>
    %44 = vector.extract_strided_slice %43 {offsets = [0, 0], sizes = [1, 35], strides = [1, 1]} : vector<1x64xf32> to vector<1x35xf32>
    %45 = vector.extract_strided_slice %43 {offsets = [0, 1], sizes = [1, 35], strides = [1, 1]} : vector<1x64xf32> to vector<1x35xf32>
    %46 = vector.extract_strided_slice %43 {offsets = [0, 2], sizes = [1, 35], strides = [1, 1]} : vector<1x64xf32> to vector<1x35xf32>
    %47 = vector.extract_strided_slice %43 {offsets = [0, 3], sizes = [1, 35], strides = [1, 1]} : vector<1x64xf32> to vector<1x35xf32>
    %48 = vector.extract_strided_slice %43 {offsets = [0, 4], sizes = [1, 35], strides = [1, 1]} : vector<1x64xf32> to vector<1x35xf32>
    %49 = vector.extract_strided_slice %43 {offsets = [0, 5], sizes = [1, 35], strides = [1, 1]} : vector<1x64xf32> to vector<1x35xf32>
    %50 = vector.extract_strided_slice %43 {offsets = [0, 6], sizes = [1, 35], strides = [1, 1]} : vector<1x64xf32> to vector<1x35xf32>
    %51 = vector.extract_strided_slice %43 {offsets = [0, 7], sizes = [1, 35], strides = [1, 1]} : vector<1x64xf32> to vector<1x35xf32>
    %52 = vector.extract_strided_slice %43 {offsets = [0, 8], sizes = [1, 35], strides = [1, 1]} : vector<1x64xf32> to vector<1x35xf32>
    %53 = vector.extract_strided_slice %43 {offsets = [0, 9], sizes = [1, 35], strides = [1, 1]} : vector<1x64xf32> to vector<1x35xf32>
    %54 = vector.extract_strided_slice %43 {offsets = [0, 10], sizes = [1, 35], strides = [1, 1]} : vector<1x64xf32> to vector<1x35xf32>
    %55 = vector.extract_strided_slice %43 {offsets = [0, 11], sizes = [1, 35], strides = [1, 1]} : vector<1x64xf32> to vector<1x35xf32>
    %56 = vector.extract_strided_slice %43 {offsets = [0, 12], sizes = [1, 35], strides = [1, 1]} : vector<1x64xf32> to vector<1x35xf32>
    %57 = vector.extract_strided_slice %43 {offsets = [0, 13], sizes = [1, 35], strides = [1, 1]} : vector<1x64xf32> to vector<1x35xf32>
    %58 = vector.extract_strided_slice %43 {offsets = [0, 14], sizes = [1, 35], strides = [1, 1]} : vector<1x64xf32> to vector<1x35xf32>
    %59 = vector.extract_strided_slice %43 {offsets = [0, 15], sizes = [1, 35], strides = [1, 1]} : vector<1x64xf32> to vector<1x35xf32>
    %60 = vector.extract_strided_slice %43 {offsets = [0, 16], sizes = [1, 35], strides = [1, 1]} : vector<1x64xf32> to vector<1x35xf32>
    %61 = vector.extract_strided_slice %43 {offsets = [0, 17], sizes = [1, 35], strides = [1, 1]} : vector<1x64xf32> to vector<1x35xf32>
    %62 = vector.extract_strided_slice %43 {offsets = [0, 18], sizes = [1, 35], strides = [1, 1]} : vector<1x64xf32> to vector<1x35xf32>
    %63 = vector.extract_strided_slice %43 {offsets = [0, 19], sizes = [1, 35], strides = [1, 1]} : vector<1x64xf32> to vector<1x35xf32>
    %64 = vector.extract_strided_slice %43 {offsets = [0, 20], sizes = [1, 35], strides = [1, 1]} : vector<1x64xf32> to vector<1x35xf32>
    %65 = vector.extract_strided_slice %43 {offsets = [0, 21], sizes = [1, 35], strides = [1, 1]} : vector<1x64xf32> to vector<1x35xf32>
    %66 = vector.extract_strided_slice %43 {offsets = [0, 22], sizes = [1, 35], strides = [1, 1]} : vector<1x64xf32> to vector<1x35xf32>
    %67 = vector.extract_strided_slice %43 {offsets = [0, 23], sizes = [1, 35], strides = [1, 1]} : vector<1x64xf32> to vector<1x35xf32>
    %68 = vector.extract_strided_slice %43 {offsets = [0, 24], sizes = [1, 35], strides = [1, 1]} : vector<1x64xf32> to vector<1x35xf32>
    %69 = vector.extract_strided_slice %43 {offsets = [0, 25], sizes = [1, 35], strides = [1, 1]} : vector<1x64xf32> to vector<1x35xf32>
    %70 = vector.extract_strided_slice %43 {offsets = [0, 26], sizes = [1, 35], strides = [1, 1]} : vector<1x64xf32> to vector<1x35xf32>
    %71 = vector.extract_strided_slice %43 {offsets = [0, 27], sizes = [1, 35], strides = [1, 1]} : vector<1x64xf32> to vector<1x35xf32>
    %72 = vector.extract_strided_slice %43 {offsets = [0, 28], sizes = [1, 35], strides = [1, 1]} : vector<1x64xf32> to vector<1x35xf32>
    %73 = vector.extract_strided_slice %43 {offsets = [0, 29], sizes = [1, 35], strides = [1, 1]} : vector<1x64xf32> to vector<1x35xf32>
    %74 = tpu.concatenate %44, %45, %46, %47, %48, %49, %50, %51, %52, %53, %54, %55, %56, %57, %58, %59 in 0 : vector<1x35xf32>, vector<1x35xf32>, vector<1x35xf32>, vector<1x35xf32>, vector<1x35xf32>, vector<1x35xf32>, vector<1x35xf32>, vector<1x35xf32>, vector<1x35xf32>, vector<1x35xf32>, vector<1x35xf32>, vector<1x35xf32>, vector<1x35xf32>, vector<1x35xf32>, vector<1x35xf32>, vector<1x35xf32> -> vector<16x35xf32>
    %75 = tpu.concatenate %60, %61, %62, %63, %64, %65, %66, %67, %68, %69, %70, %71, %72, %73 in 0 : vector<1x35xf32>, vector<1x35xf32>, vector<1x35xf32>, vector<1x35xf32>, vector<1x35xf32>, vector<1x35xf32>, vector<1x35xf32>, vector<1x35xf32>, vector<1x35xf32>, vector<1x35xf32>, vector<1x35xf32>, vector<1x35xf32>, vector<1x35xf32>, vector<1x35xf32> -> vector<14x35xf32>
    %76 = tpu.concatenate %74, %75 in 0 : vector<16x35xf32>, vector<14x35xf32> -> vector<30x35xf32>
    %cst_7 = arith.constant dense<0.000000e+00> : vector<3x35xf32>
    %77 = tpu.matmul %3, %76, %cst_7 {dimension_numbers = #tpu.dot_dimension_numbers<[1], [0], [0], [1], [0, 0, 1, 1], [], []>} : vector<3x30xf32>, vector<30x35xf32>, vector<3x35xf32> -> vector<3x35xf32>
    %78 = vector.shape_cast %77 : vector<3x35xf32> to vector<1x3x35xf32>
    %cst_8 = arith.constant dense<0xFF800000> : vector<1xf32>
    %79 = vector.multi_reduction <maximumf>, %78, %cst_8 [1, 2] : vector<1x3x35xf32> to vector<1xf32>
    %80 = vector.shape_cast %79 : vector<1xf32> to vector<1x1x1xf32>
    %81 = vector.extract %80[0, 0, 0] : f32 from vector<1x1x1xf32>
    %82 = vector.broadcast %42 : f32 to vector<1xf32>
    %83 = vector.broadcast %81 : f32 to vector<1xf32>
    %84 = tpu.concatenate %82, %83 in 0 : vector<1xf32>, vector<1xf32> -> vector<2xf32>
    %85 = vector.shape_cast %84 : vector<2xf32> to vector<1x2xf32>
    %c0_9 = arith.constant 0 : index
    %c0_10 = arith.constant 0 : index
    %86 = vector.load %arg4[%c0_9, %c0_10] : memref<1x2xf32, #tpu.memory_space<vmem>>, vector<1x2xf32>
    tpu.vector_store %arg4[%c0_9, %c0_10], %85 {strides = array<i32>} : memref<1x2xf32, #tpu.memory_space<vmem>>, vector<1x2xf32>,
    return
  }
  func.func @transform_0(%arg0: i32) -> (i32, i32) {
    %c0_i32 = arith.constant 0 : i32
    %c0_i32_0 = arith.constant 0 : i32
    return %c0_i32, %arg0 : i32, i32
  }
  func.func @transform_1(%arg0: i32) -> (i32, i32) {
    %c0_i32 = arith.constant 0 : i32
    %c0_i32_0 = arith.constant 0 : i32
    %c0_i32_1 = arith.constant 0 : i32
    return %c0_i32, %c0_i32_0 : i32, i32
  }
  func.func @transform_2(%arg0: i32) -> (i32, i32) {
    %c0_i32 = arith.constant 0 : i32
    %c0_i32_0 = arith.constant 0 : i32
    %c0_i32_1 = arith.constant 0 : i32
    return %c0_i32, %c0_i32_0 : i32, i32
  }
  func.func @transform_3(%arg0: i32) -> (i32, i32) {
    %c0_i32 = arith.constant 0 : i32
    %c0_i32_0 = arith.constant 0 : i32
    return %arg0, %c0_i32 : i32, i32
  }
}

</mosaic_0001>

<bundles_post_ra>
// kernel: tpu_custom_call.1
= control target key start
LH: loop header
LB: loop body
LE: loop exit
PB: predicated region body
PF: predicated region fallthrough
CT: control target
= control target key end

     0   :  { %8 = vsyncpa [#allocation3], 0  ;;  %s502_s0 = inlined_call_operand.hbm [shape: f32[81,128], index: 0, kind: input, shape index: {}]   ;;  %s503_s1 = inlined_call_operand.hbm [shape: f32[1,81], index: 1, kind: input, shape index: {}]   ;;  %s504_s2 = inlined_call_operand.hbm [shape: f32[3,30], index: 2, kind: input, shape index: {}]   ;;  %s505_s3 = inlined_call_operand.hbm [shape: f32[1,2], index: 3, kind: output, shape index: {}]  }
   0x1   :  { %9 = vsyncpa [#allocation6], 0  ;;  %s29_s14 = sshll.u32 %s503_s1, 4  ;;  %s30_s14 = int_to_ptr.hbm [resolvable:$true] %s29_s14 }
   0x2   :  { %10 = vsyncpa [#allocation4], 0  ;;  %s427_s15 = smov [#allocation5]   ;;  %s15_s19 = sshll.u32 %s502_s0, 4  ;;  %s16_s19 = int_to_ptr.hbm [resolvable:$true] %s15_s19 }
   0x3   :  { %s31_s16 = sshll.u32 %s427_s15, 4  ;;  %s428_s20 = smov [#allocation2]   ;;  %s32_s16 = int_to_ptr.vmem [resolvable:$true] %s31_s16 }
   0x4   :  { %34 = dma.hbm_to_vmem [thread:$0]  %s30_s14, 16, %s32_s16, [#allocation6]  }
   0x5   :  { %s17_s21 = sshll.u32 %s428_s20, 4  ;;  %s429_s22 = smov 128   ;;  %s18_s21 = int_to_ptr.vmem [resolvable:$true] %s17_s21 }
   0x6   :  { %s430_s23 = smov 8   ;;  %s40_s1 = sshll.u32 %s504_s2, 4  ;;  %s41_s1 = int_to_ptr.hbm [resolvable:$true] %s40_s1 }
   0x7   :  { %23 = dma.hbm_to_vmem [thread:$0]  %s16_s19, 1408, %s18_s21, [#allocation3], %s429_s22, %s429_s22, %s430_s23  }
   0x8   :  { %s431_s26 = smov [#allocation7]  }
   0x9   :  { %s42_s27 = sshll.u32 %s431_s26, 4  ;;  %s43_s27 = int_to_ptr.vmem [resolvable:$true] %s42_s27 }
   0xa   :  { %45 = dma.hbm_to_vmem [thread:$0]  %s41_s1, 64, %s43_s27, [#allocation6]  }
   0xb   :  { %421 = dma.done.wait [#allocation3], 1408  }
   0xc   :  { %422 = vsyncadd [#allocation3], 4294965888 }
   0xd   :  { %423 = dma.done.wait [#allocation6], 80  }
   0xe   :  { %424 = vsyncadd [#allocation6], 4294967216  ;;  %vm74_vm0 = vcmask 1040384   ;;  %v69_v0 = vld [vmem:[#allocation2 + $0x50] sm:$0x1]  ;;  %v68_v1 = vld [vmem:[#allocation2 + $0x48] sm:$0xff] }
   0xf   :  { %287 = vmatpush.msk.msra.mxu0 %vm74_vm0, %v69_v0  ;;  %v67_v2 = vld [vmem:[#allocation2 + $0x40] sm:$0xff]  ;;  %v66_v3 = vld [vmem:[#allocation2 + $0x38] sm:$0xff]  ;;  %v65_v4 = vld [vmem:[#allocation2 + $0x30] sm:$0xff]  ;;  %vm70_vm1 = vcmask 662528   ;;  %s432_s0 = smov 120   ;;  %s433_s2 = smov 118  }
  0x10   :  { %v64_v5 = vld [vmem:[#allocation2 + $0x28] sm:$0xff]  ;;  %v63_v6 = vld [vmem:[#allocation2 + $0x20] sm:$0xff]  ;;  %v62_v7 = vld [vmem:[#allocation2 + $0x18] sm:$0xff]  ;;  %s434_s28 = smov 119   ;;  %s435_s29 = smov 127   ;;  %vm153_vm2 = vcmask 1041408  }
  0x11   :  { %84 = vmatpush.msra.mxu0 %v68_v1  ;;  %v61_v8 = vld [vmem:[#allocation2 + $0x10] sm:$0xff]  ;;  %v60_v9 = vld [vmem:[#allocation2 + $0x8] sm:$0xff]  ;;  %v59_v10 = vld [vmem:[#allocation2] sm:$0xff]  ;;  %s436_s30 = smov 125   ;;  %s437_s4 = smov 126   ;;  %vm155_vm3 = vcmask 1042432  }
  0x12   :  { %v58_v11 = vld [vmem:[#allocation5] sm:$0x1]  ;;  %s438_s5 = smov 117   ;;  %s439_s6 = smov 116   ;;  %vm157_vm4 = vcmask 1043456   ;;  %vm159_vm5 = vcmask 1044480  }
  0x13   :  { %85 = vmatpush.msra.mxu0 %v67_v2  ;;  %s440_s7 = smov 124   ;;  %s441_s8 = smov 123   ;;  %vm161_vm6 = vcmask 1045504   ;;  %vm163_vm7 = vcmask 1046528   ;;  %v98_v53 = vld [vmem:[#allocation7] sm:$0x7] }
  0x14   :  { %s442_s9 = smov 122   ;;  %s443_s10 = smov 115   ;;  %vm179_vm8 = vcmask 244736   ;;  %vm205_vm9 = vcmask 280576   ;;  %vm267_vm11 = vcmask 8192  }
  0x15   :  { %86 = vmatpush.msra.mxu0 %v66_v3  ;;  %s444_s11 = smov 121   ;;  %s445_s12 = smov 114  }
  0x16   :  { %s446_s13 = smov 112   ;;  %s447_s14 = smov 113  }
  0x17   :  { %87 = vmatpush.msra.mxu0 %v65_v4  ;;  %s448_s15 = smov 64   ;;  %s449_s16 = smov [#allocation8]  }
  0x18   :  { %s274_s17 = sshll.u32 %s449_s16, 4  ;;  %s276_s21 = sshll.u32 %s505_s3, 4  ;;  %s275_s17 = int_to_ptr.vmem [resolvable:$true] %s274_s17  ;;  %s277_s21 = int_to_ptr.hbm [resolvable:$true] %s276_s21 }
  0x19   :  { %88 = vmatpush.msra.mxu0 %v64_v5 }
  0x1b   :  { %89 = vmatpush.msra.mxu0 %v63_v6 }
  0x1d   :  { %90 = vmatpush.msra.mxu0 %v62_v7 }
  0x1f   :  { %91 = vmatpush.msra.mxu0 %v61_v8 }
  0x21   :  { %92 = vmatpush.msra.mxu0 %v60_v9 }
  0x23   :  { %93 = vmatpush.msra.mxu0 %v59_v10 }
  0x24   :  { %288 = vmatmul.msk.f32.vlgmr.msra.gmra.mxu0 %vm70_vm1, %v58_v11 }
  0xa1   :  { %v480_v12 = vpop.f32.mrf.mxu0 }
  0xa2   :  { %128 = vrot.lane.b32.xlu0 %v480_v12, %s432_s0  ;;  %v104_v13 = vrot.slane %v480_v12, 6  ;;  %v100_v14 = vrot.slane %v480_v12, 7  ;;  %v108_v15 = vrot.slane %v480_v12, 5  ;;  %v112_v16 = vrot.slane %v480_v12, 4 }
  0xa3   :  { %v116_v17 = vrot.slane %v480_v12, 3  ;;  %v120_v18 = vrot.slane %v480_v12, 2  ;;  %v124_v19 = vrot.slane %v480_v12, 1 }
  0xa4   :  { %134 = vrot.lane.b32.xlu2 %v104_v13, %s433_s2  ;;  %131 = vrot.lane.b32.xlu1 %v100_v14, %s434_s28 }
  0xaa   :  { %101 = vrot.lane.b32.xlu0 %v100_v14, %s435_s29 }
  0xac   :  { %109 = vrot.lane.b32.xlu2 %v108_v15, %s436_s30  ;;  %105 = vrot.lane.b32.xlu1 %v104_v13, %s437_s4 }
  0xb2   :  { %137 = vrot.lane.b32.xlu0 %v108_v15, %s438_s5 }
  0xb4   :  { %140 = vrot.lane.b32.xlu2 %v112_v16, %s439_s6  ;;  %113 = vrot.lane.b32.xlu1 %v112_v16, %s440_s7 }
  0xba   :  { %117 = vrot.lane.b32.xlu0 %v116_v17, %s441_s8 }
  0xbc   :  { %121 = vrot.lane.b32.xlu2 %v120_v18, %s442_s9  ;;  %143 = vrot.lane.b32.xlu1 %v116_v17, %s443_s10 }
  0xc2   :  { %125 = vrot.lane.b32.xlu0 %v124_v19, %s444_s11 }
  0xc4   :  { %146 = vrot.lane.b32.xlu2 %v120_v18, %s445_s12 }
  0xfe   :  { %v135_v21 = vpop.permute.xlu2 %134 }
 0x106   :  { %v110_v25 = vpop.permute.xlu2 %109 }
 0x10e   :  { %v141_v29 = vpop.permute.xlu2 %140 }
 0x114   :  { %v129_v20 = vpop.permute.xlu0 %128 }
 0x116   :  { %v132_v22 = vpop.permute.xlu1 %131  ;;  %v122_v41 = vpop.permute.xlu2 %121 }
 0x117   :  { %v165_v28 = vsel %vm74_vm0, %v129_v20, %v132_v22 }
 0x118   :  { %v166_v31 = vsel %vm153_vm2, %v165_v28, %v135_v21 }
 0x11c   :  { %v102_v23 = vpop.permute.xlu0 %101 }
 0x11d   :  { %v152_v30 = vsel %vm74_vm0, %v480_v12, %v102_v23  ;;  %v262_v12 = vlaneseq }
 0x11e   :  { %v106_v24 = vpop.permute.xlu1 %105  ;;  %v147_v47 = vpop.permute.xlu2 %146 }
 0x11f   :  { %v154_v33 = vsel %vm153_vm2, %v152_v30, %v106_v24  ;;  %vm264_vm10 = vcmp.lt.s32.totalorder %v262_v12, 1 }
 0x120   :  { %v156_v37 = vsel %vm155_vm3, %v154_v33, %v110_v25 }
 0x124   :  { %v138_v26 = vpop.permute.xlu0 %137 }
 0x125   :  { %v167_v32 = vsel %vm155_vm3, %v166_v31, %v138_v26 }
 0x126   :  { %v114_v27 = vpop.permute.xlu1 %113  ;;  %v168_v36 = vsel %vm157_vm4, %v167_v32, %v141_v29 }
 0x127   :  { %v158_v39 = vsel %vm157_vm4, %v156_v37, %v114_v27 }
 0x12c   :  { %v118_v34 = vpop.permute.xlu0 %117 }
 0x12d   :  { %v160_v40 = vsel %vm159_vm5, %v158_v39, %v118_v34 }
 0x12e   :  { %v144_v35 = vpop.permute.xlu1 %143  ;;  %v162_v43 = vsel %vm161_vm6, %v160_v40, %v122_v41 }
 0x12f   :  { %v169_v38 = vsel %vm159_vm5, %v168_v36, %v144_v35 }
 0x130   :  { %176 = vrot.lane.b32.xlu1 %v169_v38, %s446_s13  ;;  %v170_v49 = vsel %vm161_vm6, %v169_v38, %v147_v47 }
 0x134   :  { %v126_v42 = vpop.permute.xlu0 %125 }
 0x135   :  { %v164_v44 = vsel %vm163_vm7, %v162_v43, %v126_v42 }
 0x136   :  { %174 = vrot.lane.b32.xlu0 %v164_v44, %s446_s13 }
 0x138   :  { %149 = vrot.lane.b32.xlu1 %v124_v19, %s447_s14 }
 0x140   :  { %217 = vrot.lane.b32.xlu1 %v164_v44, %s448_s15 }
 0x1a2   :  { %v177_v45 = vpop.permute.xlu1 %176 }
 0x1a3   :  { %289 = vmatpush.msk.msra.mxu1 %vm161_vm6, %v177_v45  ;;  %223 = vrot.lane.b32.xlu2 %v177_v45, %s448_s15 }
 0x1a8   :  { %v175_v46 = vpop.permute.xlu0 %174 }
 0x1a9   :  { %198 = vmatpush.msra.mxu1 %v175_v46 }
 0x1aa   :  { %v150_v48 = vpop.permute.xlu1 %149 }
 0x1ab   :  { %v171_v50 = vsel %vm163_vm7, %v170_v49, %v150_v48 }
 0x1ac   :  { %199 = vmatpush.msra.mxu1 %v171_v50  ;;  %v320_v51 = vpack.i.bf16 %v171_v50, %v175_v46 }
 0x1ae   :  { %200 = vmatpush.msra.mxu1 %v164_v44  ;;  %321 = vrot.lane.b32.xlu0 %v320_v51, %s448_s15 }
 0x1af   :  { %290 = vmatmul.msk.f32.vlgmr.msra.gmra.mxu1 %vm179_vm8, %v98_v53 }
 0x1b2   :  { %v218_v57 = vpop.permute.xlu1 %217 }
 0x1fd   :  { %v224_v52 = vpop.permute.xlu2 %223 }
 0x1fe   :  { %291 = vmatpush.msk.msra.mxu2 %vm161_vm6, %v224_v52 }
 0x220   :  { %v322_v54 = vpop.permute.xlu0 %321 }
 0x221   :  { %v323_v55 = vunpack.i.l.bf16 %v322_v54  ;;  %v324_v56 = vunpack.i.h.bf16 %v322_v54 }
 0x223   :  { %243 = vmatpush.msra.mxu2 %v323_v55 }
 0x225   :  { %244 = vmatpush.msra.mxu2 %v324_v56 }
 0x227   :  { %245 = vmatpush.msra.mxu2 %v218_v57 }
 0x228   :  { %292 = vmatmul.msk.f32.vlgmr.msra.gmra.mxu2 %vm179_vm8, %v98_v53 }
 0x22c   :  { %v202_v58 = vpop.f32.mrf.mxu1 }
 0x22d   :  { %v206_v59 = vsel %vm205_vm9, %v202_v58, -inf }
 0x22e   :  { %207 = vmax.xlane.f32.xlu2 %v206_v59 }
 0x2a1   :  { %v208_v62 = vpop.xlane.xlu2 %207 }
 0x2a2   :  { %v209_v63 = vrot.slane %v208_v62, 4 }
 0x2a4   :  { %v210_v0 = vmax.f32 %v208_v62, %v209_v63 }
 0x2a6   :  { %v211_v1 = vrot.slane %v210_v0, 2 }
 0x2a8   :  { %v212_v2 = vmax.f32 %v210_v0, %v211_v1 }
 0x2aa   :  { %v213_v3 = vrot.slane %v212_v2, 1 }
 0x2ab   :  { %v247_v60 = vpop.f32.mrf.mxu2 }
 0x2ac   :  { %v250_v61 = vsel %vm205_vm9, %v247_v60, -inf  ;;  %v214_v4 = vmax.f32 %v212_v2, %v213_v3 }
 0x2ad   :  { %251 = vmax.xlane.f32.xlu0 %v250_v61 }
 0x2ae   :  { %293 = vpush %v214_v4 }
 0x2df   :  { %s294_s18 = spop %293 }
 0x2e0   :  { %v260_v13 = vstv %s294_s18 }
 0x320   :  { %v252_v5 = vpop.xlane.xlu0 %251 }
 0x321   :  { %v253_v6 = vrot.slane %v252_v5, 4 }
 0x323   :  { %v254_v7 = vmax.f32 %v252_v5, %v253_v6 }
 0x325   :  { %v255_v8 = vrot.slane %v254_v7, 2 }
 0x327   :  { %v256_v9 = vmax.f32 %v254_v7, %v255_v8 }
 0x329   :  { %v257_v10 = vrot.slane %v256_v9, 1 }
 0x32b   :  { %v258_v11 = vmax.f32 %v256_v9, %v257_v10 }
 0x32d   :  { %295 = vpush %v258_v11 }
 0x35e   :  { %s296_s22 = spop %295 }
 0x35f   :  { %v261_v14 = vstv %s296_s22 }
 0x360   :  { %v266_v15 = vsel %vm264_vm10, %v260_v13, %v261_v14 }
 0x361   :  { %268 = vst.msk [vmem:[#allocation8] sm:$0x1] %vm267_vm11, %v266_v15 }
 0x362   :  { %279 = dma.vmem_to_hbm [thread:$0]  %s275_s17, 16, %s277_s21, [#allocation4]  }
 0x363   :  { %425 = dma.done.wait [#allocation4], 16  }
 0x364   :  { %426 = vsyncadd [#allocation4], 4294967280 }
 0x365   :  { %284 = vsyncpa [#allocation3], 1 }
 0x366   :  { %285 = vsyncpa [#allocation6], 1 }
 0x367   :  { %286 = vsyncpa [#allocation4], 1 }

</bundles_post_ra>
